<compile_context>
chip_gen: v6e
topology: v6e:2x2x1
jax: 0.10.0
libtpu: 0.0.40
codegen_flags: <defaults>
</compile_context>

<pallas_src>
import jax
import jax.numpy as jnp
from jax.experimental import pallas as pl
from jax.experimental.pallas import tpu as pltpu


def _round_up(x, m):
    return (x + m - 1) // m * m


def mlp_probs_kernel(x_ref, w1_ref, b1_ref, w2_ref, b2_ref, o_ref):
    # x_ref:  (TILE_B, D_in)   f32  (streams through VMEM)
    # w1_ref: (D_in, H)        f32, resident across grid steps
    # b1_ref: (1, H)           f32, resident
    # w2_ref: (H, D_out)       f32, resident
    # b2_ref: (1, D_out)       f32, resident
    # o_ref:  (D_out, TILE_B)  f32  (transposed -> lane-dense stores)
    h = jnp.dot(x_ref[...], w1_ref[...],
                preferred_element_type=jnp.float32)            # (TILE_B, H)
    h = jnp.maximum(h + b1_ref[...], 0.0)                      # bias + ReLU
    logits = jnp.dot(h, w2_ref[...],
                     preferred_element_type=jnp.float32)       # (TILE_B, D_out)
    logits = logits + b2_ref[...]

    # Transpose the small logits tile so the batch dim sits on the 128-lane
    # axis: softmax elementwise work and the output store become lane-dense.
    lt = logits.T                                              # (D_out, TILE_B)
    m = jnp.max(lt, axis=0, keepdims=True)
    e = jnp.exp(lt - m)
    denom = jnp.sum(e, axis=0, keepdims=True)
    # Exact normalization so every row sums to 1 (approx reciprocal did not).
    o_ref[...] = e / denom


def mlp_probs(x, w1, b1, w2, b2, *, tile_b=2048):
    """softmax(relu(x @ w1 + b1) @ w2 + b2) over the last axis.

    x: (B, D_in); w1: (D_in, H); b1: (1, H); w2: (H, D_out); b2: (1, D_out).
    Weights are stored (in, out), i.e. the transpose of nn.Linear.weight.
    """
    B, D_in = x.shape
    H = w1.shape[1]
    D_out = w2.shape[1]

    # Batch tile: multiple of 128 so the transposed output block is lane-dense
    # and the x block respects (8,128) tiling.  Per-row VMEM footprint is tiny
    # (~(D_in + H + D_out) * 4 B), so large tiles fit comfortably even in
    # v7x's 64 MiB VMEM with double-buffering.
    tile = min(_round_up(tile_b, 128), _round_up(B, 128))
    b_pad = _round_up(B, tile)

    x_p = x.astype(jnp.float32)
    if b_pad != B:
        x_p = jnp.pad(x_p, ((0, b_pad - B), (0, 0)))
    w1_c = w1.astype(jnp.float32)
    w2_c = w2.astype(jnp.float32)
    b1_c = b1.astype(jnp.float32).reshape(1, H)
    b2_c = b2.astype(jnp.float32).reshape(1, D_out)

    cost = pl.CostEstimate(
        flops=2 * b_pad * (D_in * H + H * D_out),
        transcendentals=b_pad * D_out,
        bytes_accessed=(b_pad * D_in                 # x in
                        + D_in * H + H * D_out       # weights
                        + H + D_out                  # biases
                        + b_pad * D_out) * 4,        # out
    )

    out_t = pl.pallas_call(
        mlp_probs_kernel,
        out_shape=jax.ShapeDtypeStruct((D_out, b_pad), jnp.float32),
        grid=(b_pad // tile,),
        in_specs=[
            pl.BlockSpec((tile, D_in), lambda i: (i, 0)),    # x: streams
            pl.BlockSpec((D_in, H), lambda i: (0, 0)),       # w1: resident
            pl.BlockSpec((1, H), lambda i: (0, 0)),          # b1: resident
            pl.BlockSpec((H, D_out), lambda i: (0, 0)),      # w2: resident
            pl.BlockSpec((1, D_out), lambda i: (0, 0)),      # b2: resident
        ],
        out_specs=pl.BlockSpec((D_out, tile), lambda i: (0, i)),
        compiler_params=pltpu.CompilerParams(
            dimension_semantics=("parallel",),               # megacore on v7x
        ),
        cost_estimate=cost,
    )(x_p, w1_c, b1_c, w2_c, b2_c)

    # Back to (B, D_out) row layout; drop the batch padding.
    return out_t.T[:B]


def reference(x, w1, b1, w2, b2):
    # Accurate f32 reference (HIGHEST precision so the only delta is the
    # kernel's own MXU rounding).
    h = jnp.dot(x, w1, precision=jax.lax.Precision.HIGHEST) + b1
    h = jnp.maximum(h, 0.0)
    logits = jnp.dot(h, w2, precision=jax.lax.Precision.HIGHEST) + b2
    return jax.nn.softmax(logits, axis=-1)


if __name__ == "__main__":
    # MLP_probs(input=16, output=4), batch=8 (small demo shapes).
    # NOTE: at B=8 the pallas_call launch overhead dwarfs the ~5 KFLOP of
    # work — the tiling/pipelining pays off once many rows are batched per
    # call (the wrapper handles any B).
    B, D_in, H, D_out = 8, 16, 32, 4

    key = jax.random.PRNGKey(0)
    kx, k1, k2, k3, k4 = jax.random.split(key, 5)

    x = jax.random.normal(kx, (B, D_in), dtype=jnp.float32)

    # Deterministic parameter init (PyTorch-style uniform bounds), stored as
    # (in, out) so the kernel computes x @ W directly.
    bound1 = 1.0 / (D_in ** 0.5)
    w1 = jax.random.uniform(k1, (D_in, H), jnp.float32, -bound1, bound1)
    b1 = jax.random.uniform(k2, (1, H), jnp.float32, -bound1, bound1)
    bound2 = 1.0 / (H ** 0.5)
    w2 = jax.random.uniform(k3, (H, D_out), jnp.float32, -bound2, bound2)
    b2 = jax.random.uniform(k4, (1, D_out), jnp.float32, -bound2, bound2)

    out = mlp_probs(x, w1, b1, w2, b2)
    out = jax.block_until_ready(out)

    ref = reference(x, w1, b1, w2, b2)
    assert out.shape == (B, D_out)
    assert jnp.allclose(out, ref, atol=2e-3, rtol=2e-3), "mismatch vs reference"
    assert jnp.allclose(jnp.sum(out, axis=-1), 1.0, atol=1e-3), "rows must sum to 1"

    print("KERNEL_OK")
</pallas_src>

<mosaic_0001>
module attributes {stable_mosaic.version = 11 : i64} {
  func.func @mlp_probs_kernel(%arg0: i32, %arg1: memref<128x16xf32, #tpu.memory_space<vmem>>, %arg2: memref<16x32xf32, #tpu.memory_space<vmem>>, %arg3: memref<1x32xf32, #tpu.memory_space<vmem>>, %arg4: memref<32x4xf32, #tpu.memory_space<vmem>>, %arg5: memref<1x4xf32, #tpu.memory_space<vmem>>, %arg6: memref<4x128xf32, #tpu.memory_space<vmem>>) attributes {dimension_semantics = [#tpu.dimension_semantics<parallel>], iteration_bounds = array<i64: 1>, scalar_prefetch = 0 : i64, scratch_operands = 0 : i64, tpu.core_type = #tpu.core_type<tc>, window_params = [{transform_indices = @transform_0, window_bounds = array<i64: 128, 16>}, {pipeline_mode = #tpu.pipeline_mode<synchronous>, transform_indices = @transform_1, window_bounds = array<i64: 16, 32>}, {pipeline_mode = #tpu.pipeline_mode<synchronous>, transform_indices = @transform_2, window_bounds = array<i64: 1, 32>}, {pipeline_mode = #tpu.pipeline_mode<synchronous>, transform_indices = @transform_3, window_bounds = array<i64: 32, 4>}, {pipeline_mode = #tpu.pipeline_mode<synchronous>, transform_indices = @transform_4, window_bounds = array<i64: 1, 4>}, {transform_indices = @transform_5, window_bounds = array<i64: 4, 128>}]} {
    %c0 = arith.constant 0 : index
    %c0_0 = arith.constant 0 : index
    %0 = vector.load %arg1[%c0, %c0_0] : memref<128x16xf32, #tpu.memory_space<vmem>>, vector<128x16xf32>
    %c0_1 = arith.constant 0 : index
    %c0_2 = arith.constant 0 : index
    %1 = vector.load %arg2[%c0_1, %c0_2] : memref<16x32xf32, #tpu.memory_space<vmem>>, vector<16x32xf32>
    %cst = arith.constant dense<0.000000e+00> : vector<128x32xf32>
    %2 = tpu.matmul %0, %1, %cst {dimension_numbers = #tpu.dot_dimension_numbers<[1], [0], [0], [1], [0, 0, 1, 1], [], []>} : vector<128x16xf32>, vector<16x32xf32>, vector<128x32xf32> -> vector<128x32xf32>
    %c0_3 = arith.constant 0 : index
    %c0_4 = arith.constant 0 : index
    %3 = vector.load %arg3[%c0_3, %c0_4] : memref<1x32xf32, #tpu.memory_space<vmem>>, vector<1x32xf32>
    %4 = vector.broadcast %3 : vector<1x32xf32> to vector<128x32xf32>
    %5 = arith.addf %2, %4 : vector<128x32xf32>
    %cst_5 = arith.constant 0.000000e+00 : f32
    %6 = vector.broadcast %cst_5 : f32 to vector<128x32xf32>
    %7 = arith.maximumf %5, %6 : vector<128x32xf32>
    %c0_6 = arith.constant 0 : index
    %c0_7 = arith.constant 0 : index
    %8 = vector.load %arg4[%c0_6, %c0_7] : memref<32x4xf32, #tpu.memory_space<vmem>>, vector<32x4xf32>
    %cst_8 = arith.constant dense<0.000000e+00> : vector<128x4xf32>
    %9 = tpu.matmul %7, %8, %cst_8 {dimension_numbers = #tpu.dot_dimension_numbers<[1], [0], [0], [1], [0, 0, 1, 1], [], []>} : vector<128x32xf32>, vector<32x4xf32>, vector<128x4xf32> -> vector<128x4xf32>
    %c0_9 = arith.constant 0 : index
    %c0_10 = arith.constant 0 : index
    %10 = vector.load %arg5[%c0_9, %c0_10] : memref<1x4xf32, #tpu.memory_space<vmem>>, vector<1x4xf32>
    %11 = vector.broadcast %10 : vector<1x4xf32> to vector<128x4xf32>
    %12 = arith.addf %9, %11 : vector<128x4xf32>
    %13 = tpu.transpose %12, [1, 0] : vector<128x4xf32> -> vector<4x128xf32>
    %cst_11 = arith.constant dense<0xFF800000> : vector<128xf32>
    %14 = vector.multi_reduction <maximumf>, %13, %cst_11 [0] : vector<4x128xf32> to vector<128xf32>
    %15 = vector.shape_cast %14 : vector<128xf32> to vector<1x128xf32>
    %16 = vector.broadcast %15 : vector<1x128xf32> to vector<4x128xf32>
    %17 = arith.subf %13, %16 : vector<4x128xf32>
    %18 = math.exp %17 : vector<4x128xf32>
    %cst_12 = arith.constant dense<0.000000e+00> : vector<128xf32>
    %19 = vector.multi_reduction <add>, %18, %cst_12 [0] : vector<4x128xf32> to vector<128xf32>
    %20 = vector.shape_cast %19 : vector<128xf32> to vector<1x128xf32>
    %21 = vector.broadcast %20 : vector<1x128xf32> to vector<4x128xf32>
    %22 = arith.divf %18, %21 : vector<4x128xf32>
    %c0_13 = arith.constant 0 : index
    %c0_14 = arith.constant 0 : index
    %23 = vector.load %arg6[%c0_13, %c0_14] : memref<4x128xf32, #tpu.memory_space<vmem>>, vector<4x128xf32>
    tpu.vector_store %arg6[%c0_13, %c0_14], %22 {strides = array<i32>} : memref<4x128xf32, #tpu.memory_space<vmem>>, vector<4x128xf32>,
    return
  }
  func.func @transform_0(%arg0: i32) -> (i32, i32) {
    %c0_i32 = arith.constant 0 : i32
    %c0_i32_0 = arith.constant 0 : i32
    return %arg0, %c0_i32 : i32, i32
  }
  func.func @transform_1(%arg0: i32) -> (i32, i32) {
    %c0_i32 = arith.constant 0 : i32
    %c0_i32_0 = arith.constant 0 : i32
    %c0_i32_1 = arith.constant 0 : i32
    return %c0_i32, %c0_i32_0 : i32, i32
  }
  func.func @transform_2(%arg0: i32) -> (i32, i32) {
    %c0_i32 = arith.constant 0 : i32
    %c0_i32_0 = arith.constant 0 : i32
    %c0_i32_1 = arith.constant 0 : i32
    return %c0_i32, %c0_i32_0 : i32, i32
  }
  func.func @transform_3(%arg0: i32) -> (i32, i32) {
    %c0_i32 = arith.constant 0 : i32
    %c0_i32_0 = arith.constant 0 : i32
    %c0_i32_1 = arith.constant 0 : i32
    return %c0_i32, %c0_i32_0 : i32, i32
  }
  func.func @transform_4(%arg0: i32) -> (i32, i32) {
    %c0_i32 = arith.constant 0 : i32
    %c0_i32_0 = arith.constant 0 : i32
    %c0_i32_1 = arith.constant 0 : i32
    return %c0_i32, %c0_i32_0 : i32, i32
  }
  func.func @transform_5(%arg0: i32) -> (i32, i32) {
    %c0_i32 = arith.constant 0 : i32
    %c0_i32_0 = arith.constant 0 : i32
    return %c0_i32, %arg0 : i32, i32
  }
}

</mosaic_0001>

<bundles_post_ra>
// kernel: tpu_custom_call.1
= control target key start
LH: loop header
LB: loop body
LE: loop exit
PB: predicated region body
PF: predicated region fallthrough
CT: control target
= control target key end

     0   :  { %vm46_vm0 = vcmask 130048   ;;  %s825_s0 = inlined_call_operand.vmem [shape: f32[128,16], index: 0, kind: input, shape index: {}]   ;;  %s826_s1 = inlined_call_operand.vmem [shape: f32[16,32], index: 1, kind: input, shape index: {}]   ;;  %s827_s2 = inlined_call_operand.vmem [shape: f32[1,32], index: 2, kind: input, shape index: {}]   ;;  %s828_s3 = inlined_call_operand.vmem [shape: f32[32,4], index: 3, kind: input, shape index: {}]   ;;  %s829_s4 = inlined_call_operand.vmem [shape: f32[1,4], index: 4, kind: input, shape index: {}]   ;;  %s830_s5 = inlined_call_operand.hbm [shape: f32[4,128], index: 5, kind: output, shape index: {}]  }
   0x1   :  { %v38_v0 = vld [vmem:[%s826_s1 + $0x8] sm:$0xff]  ;;  %v37_v1 = vld [vmem:[%s826_s1] sm:$0xff]  ;;  %v23_v4 = vld [vmem:[%s825_s0 + $0x10] sm:$0xff] }
   0x2   :  { %v21_v2 = vld [vmem:[%s825_s0] sm:$0xff]  ;;  %600 = vmatprep.subr.mxu0 %v38_v0  ;;  %v22_v3 = vld [vmem:[%s825_s0 + $0x8] sm:$0xff]  ;;  %v24_v5 = vld [vmem:[%s825_s0 + $0x18] sm:$0xff] }
   0x3   :  { %604 = vmatprep.mubr.msk.f32.mxu0 %vm46_vm0, %v21_v2  ;;  %601 = vmatpush3.msra.mxu0 %v38_v0 }
   0x4   :  { %602 = vmatprep.subr.mxu0 %v37_v1 }
   0x5   :  { %603 = vmatpush3.msra.mxu0 %v37_v1 }
   0x6   :  { %605 = vmatmul.mubr.msk.f32.vlgmr.msra.gmra.mxu0 %vm46_vm0, %v22_v3 }
   0x7   :  { %607 = vmatprep.mubr.msk.f32.mxu0 %vm46_vm0, %v23_v4 }
   0x8   :  { %10 = vsyncpa [#allocation3], 0  ;;  %v25_v6 = vld [vmem:[%s825_s0 + $0x20] sm:$0xff]  ;;  %v26_v7 = vld [vmem:[%s825_s0 + $0x28] sm:$0xff]  ;;  %vm267_vm1 = vcmask 261120   ;;  %vm493_vm2 = vcmask 1043456  }
   0x9   :  { %v27_v8 = vld [vmem:[%s825_s0 + $0x30] sm:$0xff]  ;;  %v28_v9 = vld [vmem:[%s825_s0 + $0x38] sm:$0xff]  ;;  %v29_v10 = vld [vmem:[%s825_s0 + $0x40] sm:$0xff] }
   0xa   :  { %608 = vmatmul.mubr.msk.f32.gmra.mxu0 %vm46_vm0, %v24_v5  ;;  %v30_v11 = vld [vmem:[%s825_s0 + $0x48] sm:$0xff]  ;;  %v31_v12 = vld [vmem:[%s825_s0 + $0x50] sm:$0xff]  ;;  %v32_v13 = vld [vmem:[%s825_s0 + $0x58] sm:$0xff] }
   0xb   :  { %610 = vmatprep.mubr.msk.f32.mxu0 %vm46_vm0, %v25_v6  ;;  %v33_v14 = vld [vmem:[%s825_s0 + $0x60] sm:$0xff]  ;;  %v34_v15 = vld [vmem:[%s825_s0 + $0x68] sm:$0xff]  ;;  %v35_v16 = vld [vmem:[%s825_s0 + $0x70] sm:$0xff] }
   0xc   :  { %v36_v17 = vld [vmem:[%s825_s0 + $0x78] sm:$0xff]  ;;  %v258_v19 = vld [vmem:[%s828_s3 + $0x10] sm:$0xff]  ;;  %v257_v20 = vld [vmem:[%s828_s3 + $0x8] sm:$0xff] }
   0xd   :  { %v259_v18 = vld [vmem:[%s828_s3 + $0x18] sm:$0xff]  ;;  %v256_v21 = vld [vmem:[%s828_s3] sm:$0xff] }
   0xe   :  { %611 = vmatmul.mubr.msk.f32.gmra.mxu0 %vm46_vm0, %v26_v7  ;;  %628 = vmatprep.subr.mxu1 %v259_v18  ;;  %v528_v22 = vld [vmem:[%s827_s2] ss:$0 sm:$0xff] }
   0xf   :  { %613 = vmatprep.mubr.msk.f32.mxu0 %vm46_vm0, %v27_v8  ;;  %629 = vmatpush3.msra.mxu1 %v259_v18  ;;  %v545_v8 = vld [vmem:[%s829_s4] ss:$0 sm:$0xff]  ;;  %s687_s4 = smov [#allocation2]  }
  0x10   :  { %630 = vmatprep.subr.mxu1 %v258_v19  ;;  %s520_s11 = sshll.u32 %s687_s4, 4  ;;  %s521_s11 = int_to_ptr.vmem [resolvable:$true] %s520_s11 }
  0x11   :  { %631 = vmatpush3.msra.mxu1 %v258_v19  ;;  %s665_s12 = scalar_lea.vmem %s521_s11, 64  ;;  %p670_p1 = scmp.lt.s32.totalorder %s521_s11, %s521_s11 }
  0x12   :  { %614 = vmatmul.mubr.msk.f32.gmra.mxu0 %vm46_vm0, %v28_v9  ;;  %632 = vmatprep.subr.mxu1 %v257_v20  ;;  %p666_p0 = scmp.ne.s32.totalorder %s521_s11, %s665_s12  ;;  %p671_p2 = scmp.lt.s32.totalorder %s665_s12, %s665_s12 }
  0x13   :  { %616 = vmatprep.mubr.msk.f32.mxu0 %vm46_vm0, %v29_v10  ;;  %633 = vmatpush3.msra.mxu1 %v257_v20 }
  0x14   :  { %634 = vmatprep.subr.mxu1 %v256_v21  ;;  %p672_p3 = por %p671_p2, %p670_p1 }
  0x15   :  { %635 = vmatpush3.msra.mxu1 %v256_v21 }
  0x16   :  { %617 = vmatmul.mubr.msk.f32.gmra.mxu0 %vm46_vm0, %v30_v11  ;;  %p673_p4 = pnand %p672_p3, %p666_p0 }
  0x17   :  { %619 = vmatprep.mubr.msk.f32.mxu0 %vm46_vm0, %v31_v12 }
  0x1a   :  { %620 = vmatmul.mubr.msk.f32.gmra.mxu0 %vm46_vm0, %v32_v13 }
  0x1b   :  { %622 = vmatprep.mubr.msk.f32.mxu0 %vm46_vm0, %v33_v14 }
  0x1e   :  { %623 = vmatmul.mubr.msk.f32.gmra.mxu0 %vm46_vm0, %v34_v15 }
  0x1f   :  { %625 = vmatprep.mubr.msk.f32.mxu0 %vm46_vm0, %v35_v16 }
  0x22   :  { %626 = vmatmul.mubr.msk.f32.gmra.mxu0 %vm46_vm0, %v36_v17 }
  0xc6   :  { %v606_v23 = vpop.f32.mrf.mxu0 }
  0xc7   :  { %v167_v24 = vadd.f32 %v606_v23, %v528_v22 }
  0xc8   :  { %v161_v25 = vpop.f32.mrf.mxu0 }
  0xc9   :  { %v162_v26 = vadd.f32 %v528_v22, %v161_v25  ;;  %v241_v30 = vmax.f32 %v167_v24, 0.0 }
  0xca   :  { %v609_v27 = vpop.f32.mrf.mxu0 }
  0xcb   :  { %v240_v28 = vmax.f32 %v162_v26, 0.0  ;;  %v177_v29 = vadd.f32 %v609_v27, %v528_v22 }
  0xcc   :  { %v171_v31 = vpop.f32.mrf.mxu0 }
  0xcd   :  { %v172_v32 = vadd.f32 %v528_v22, %v171_v31  ;;  %636 = vmatprep.mubr.msk.f32.mxu1 %vm267_vm1, %v240_v28  ;;  %v243_v33 = vmax.f32 %v177_v29, 0.0 }
  0xce   :  { %637 = vmatmul.mubr.msk.f32.vlgmr.msra.gmra.mxu1 %vm267_vm1, %v241_v30  ;;  %v612_v34 = vpop.f32.mrf.mxu0 }
  0xcf   :  { %v242_v35 = vmax.f32 %v172_v32, 0.0  ;;  %v187_v36 = vadd.f32 %v612_v34, %v528_v22 }
  0xd0   :  { %v181_v37 = vpop.f32.mrf.mxu0 }
  0xd1   :  { %639 = vmatprep.mubr.msk.f32.mxu1 %vm267_vm1, %v242_v35  ;;  %v182_v38 = vadd.f32 %v528_v22, %v181_v37  ;;  %v245_v39 = vmax.f32 %v187_v36, 0.0 }
  0xd2   :  { %640 = vmatmul.mubr.msk.f32.gmra.mxu1 %vm267_vm1, %v243_v33  ;;  %v615_v40 = vpop.f32.mrf.mxu0 }
  0xd3   :  { %v244_v41 = vmax.f32 %v182_v38, 0.0  ;;  %v197_v42 = vadd.f32 %v615_v40, %v528_v22 }
  0xd4   :  { %v191_v43 = vpop.f32.mrf.mxu0 }
  0xd5   :  { %642 = vmatprep.mubr.msk.f32.mxu1 %vm267_vm1, %v244_v41  ;;  %v192_v44 = vadd.f32 %v528_v22, %v191_v43  ;;  %v247_v45 = vmax.f32 %v197_v42, 0.0 }
  0xd6   :  { %643 = vmatmul.mubr.msk.f32.gmra.mxu1 %vm267_vm1, %v245_v39  ;;  %v618_v46 = vpop.f32.mrf.mxu0 }
  0xd7   :  { %v246_v47 = vmax.f32 %v192_v44, 0.0  ;;  %v207_v48 = vadd.f32 %v618_v46, %v528_v22 }
  0xd8   :  { %v201_v49 = vpop.f32.mrf.mxu0 }
  0xd9   :  { %645 = vmatprep.mubr.msk.f32.mxu1 %vm267_vm1, %v246_v47  ;;  %v202_v50 = vadd.f32 %v528_v22, %v201_v49  ;;  %v249_v51 = vmax.f32 %v207_v48, 0.0 }
  0xda   :  { %646 = vmatmul.mubr.msk.f32.gmra.mxu1 %vm267_vm1, %v247_v45  ;;  %v621_v52 = vpop.f32.mrf.mxu0 }
  0xdb   :  { %v248_v53 = vmax.f32 %v202_v50, 0.0  ;;  %v217_v54 = vadd.f32 %v621_v52, %v528_v22 }
  0xdc   :  { %v211_v55 = vpop.f32.mrf.mxu0 }
  0xdd   :  { %648 = vmatprep.mubr.msk.f32.mxu1 %vm267_vm1, %v248_v53  ;;  %v212_v56 = vadd.f32 %v528_v22, %v211_v55  ;;  %v251_v57 = vmax.f32 %v217_v54, 0.0 }
  0xde   :  { %649 = vmatmul.mubr.msk.f32.gmra.mxu1 %vm267_vm1, %v249_v51  ;;  %v624_v58 = vpop.f32.mrf.mxu0 }
  0xdf   :  { %v250_v59 = vmax.f32 %v212_v56, 0.0  ;;  %v227_v60 = vadd.f32 %v624_v58, %v528_v22 }
  0xe0   :  { %v221_v61 = vpop.f32.mrf.mxu0 }
  0xe1   :  { %651 = vmatprep.mubr.msk.f32.mxu1 %vm267_vm1, %v250_v59  ;;  %v222_v62 = vadd.f32 %v528_v22, %v221_v61  ;;  %v253_v63 = vmax.f32 %v227_v60, 0.0 }
  0xe2   :  { %652 = vmatmul.mubr.msk.f32.gmra.mxu1 %vm267_vm1, %v251_v57  ;;  %v627_v0 = vpop.f32.mrf.mxu0 }
  0xe3   :  { %v252_v1 = vmax.f32 %v222_v62, 0.0  ;;  %v237_v2 = vadd.f32 %v627_v0, %v528_v22 }
  0xe4   :  { %v231_v3 = vpop.f32.mrf.mxu0 }
  0xe5   :  { %654 = vmatprep.mubr.msk.f32.mxu1 %vm267_vm1, %v252_v1  ;;  %v232_v4 = vadd.f32 %v528_v22, %v231_v3  ;;  %v255_v5 = vmax.f32 %v237_v2, 0.0 }
  0xe6   :  { %655 = vmatmul.mubr.msk.f32.gmra.mxu1 %vm267_vm1, %v253_v63 }
  0xe7   :  { %v254_v6 = vmax.f32 %v232_v4, 0.0 }
  0xe9   :  { %657 = vmatprep.mubr.msk.f32.mxu1 %vm267_vm1, %v254_v6 }
  0xea   :  { %658 = vmatmul.mubr.msk.f32.gmra.mxu1 %vm267_vm1, %v255_v5 }
 0x18e   :  { %v638_v7 = vpop.f32.mrf.mxu1 }
 0x18f   :  { %v388_v12 = vadd.f32 %v638_v7, %v545_v8 }
 0x190   :  { %v382_v9 = vpop.f32.mrf.mxu1 }
 0x191   :  { %v383_v10 = vadd.f32 %v545_v8, %v382_v9 }
 0x192   :  { %v641_v11 = vpop.f32.mrf.mxu1 }
 0x193   :  { %461 = vxpose.xlu0.b32.start [1/16] (narrow) %v383_v10, 8  ;;  %v398_v16 = vadd.f32 %v641_v11, %v545_v8 }
 0x194   :  { %v392_v13 = vpop.f32.mrf.mxu1 }
 0x195   :  { %v393_v14 = vadd.f32 %v545_v8, %v392_v13 }
 0x196   :  { %v644_v15 = vpop.f32.mrf.mxu1 }
 0x197   :  { %462 = vxpose.xlu0.b32.cont [2/16] (narrow) %v388_v12, 8  ;;  %v408_v20 = vadd.f32 %v644_v15, %v545_v8 }
 0x198   :  { %v402_v17 = vpop.f32.mrf.mxu1 }
 0x199   :  { %v403_v18 = vadd.f32 %v545_v8, %v402_v17 }
 0x19a   :  { %v647_v19 = vpop.f32.mrf.mxu1 }
 0x19b   :  { %463 = vxpose.xlu0.b32.cont [3/16] (narrow) %v393_v14, 8  ;;  %v418_v24 = vadd.f32 %v647_v19, %v545_v8 }
 0x19c   :  { %v412_v21 = vpop.f32.mrf.mxu1 }
 0x19d   :  { %v413_v22 = vadd.f32 %v545_v8, %v412_v21 }
 0x19e   :  { %v650_v23 = vpop.f32.mrf.mxu1 }
 0x19f   :  { %464 = vxpose.xlu0.b32.cont [4/16] (narrow) %v398_v16, 8  ;;  %v428_v28 = vadd.f32 %v650_v23, %v545_v8 }
 0x1a0   :  { %v422_v25 = vpop.f32.mrf.mxu1 }
 0x1a1   :  { %v423_v26 = vadd.f32 %v545_v8, %v422_v25 }
 0x1a2   :  { %v653_v27 = vpop.f32.mrf.mxu1 }
 0x1a3   :  { %465 = vxpose.xlu0.b32.cont [5/16] (narrow) %v403_v18, 8  ;;  %v438_v32 = vadd.f32 %v653_v27, %v545_v8 }
 0x1a4   :  { %v432_v29 = vpop.f32.mrf.mxu1 }
 0x1a5   :  { %v433_v30 = vadd.f32 %v545_v8, %v432_v29 }
 0x1a6   :  { %v656_v31 = vpop.f32.mrf.mxu1 }
 0x1a7   :  { %466 = vxpose.xlu0.b32.cont [6/16] (narrow) %v408_v20, 8  ;;  %v448_v36 = vadd.f32 %v656_v31, %v545_v8 }
 0x1a8   :  { %v442_v33 = vpop.f32.mrf.mxu1 }
 0x1a9   :  { %v443_v34 = vadd.f32 %v545_v8, %v442_v33 }
 0x1aa   :  { %v659_v35 = vpop.f32.mrf.mxu1 }
 0x1ab   :  { %467 = vxpose.xlu0.b32.cont [7/16] (narrow) %v413_v22, 8  ;;  %v458_v39 = vadd.f32 %v659_v35, %v545_v8 }
 0x1ac   :  { %v452_v37 = vpop.f32.mrf.mxu1 }
 0x1ad   :  { %v453_v38 = vadd.f32 %v545_v8, %v452_v37 }
 0x1af   :  { %468 = vxpose.xlu0.b32.cont [8/16] (narrow) %v418_v24, 8 }
 0x1b3   :  { %469 = vxpose.xlu0.b32.cont [9/16] (narrow) %v423_v26, 8 }
 0x1b7   :  { %470 = vxpose.xlu0.b32.cont [10/16] (narrow) %v428_v28, 8 }
 0x1bb   :  { %471 = vxpose.xlu0.b32.cont [11/16] (narrow) %v433_v30, 8 }
 0x1bf   :  { %472 = vxpose.xlu0.b32.cont [12/16] (narrow) %v438_v32, 8 }
 0x1c3   :  { %473 = vxpose.xlu0.b32.cont [13/16] (narrow) %v443_v34, 8 }
 0x1c7   :  { %474 = vxpose.xlu0.b32.cont [14/16] (narrow) %v448_v36, 8 }
 0x1cb   :  { %475 = vxpose.xlu0.b32.cont [15/16] (narrow) %v453_v38, 8 }
 0x1cf   :  { %476 = vxpose.xlu0.b32.end [16/16] (narrow) %v458_v39, 8 }
 0x20f   :  { %v477_v40 = vpop.trf.xlu0 }
 0x210   :  { %v494_v41 = vsel %vm493_vm2, %v477_v40, -inf }
 0x211   :  { %v495_v42 = vrot.slane %v494_v41, 4 }
 0x213   :  { %v496_v43 = vmax.f32 %v494_v41, %v495_v42 }
 0x215   :  { %v497_v44 = vrot.slane %v496_v43, 2 }
 0x217   :  { %v498_v45 = vmax.f32 %v496_v43, %v497_v44 }
 0x219   :  { %v499_v46 = vrot.slane %v498_v45, 1 }
 0x21b   :  { %v500_v47 = vmax.f32 %v498_v45, %v499_v46 }
 0x21d   :  { %v501_v48 = vsub.f32 %v477_v40, %v500_v47 }
 0x21f   :  { %v502_v49 = vmul.f32 1.442695, %v501_v48 }
 0x221   :  { %661 = vpow2.f32 %v502_v49 }
 0x22e   :  { %v662_v50 = vpop.eup %661 }
 0x22f   :  { %v504_v51 = vsel %vm493_vm2, %v662_v50, 0.0 }
 0x230   :  { %v505_v52 = vrot.slane %v504_v51, 4 }
 0x232   :  { %v506_v53 = vadd.f32 %v505_v52, %v504_v51 }
 0x234   :  { %v507_v54 = vrot.slane %v506_v53, 2 }
 0x236   :  { %v508_v55 = vadd.f32 %v507_v54, %v506_v53 }
 0x238   :  { %v509_v56 = vrot.slane %v508_v55, 1 }
 0x23a   :  { %v510_v57 = vadd.f32 %v509_v56, %v508_v55 }
 0x23c   :  { %663 = vrcp.f32 %v510_v57 }
 0x249   :  { %v664_v58 = vpop.eup %663 }
 0x24a   :  { %v512_v59 = vmul.f32 %v664_v58, %v662_v50 }
 0x24c   :  { %513 = vst [vmem:[#allocation2] sm:$0xf] %v512_v59 }
 0x24d   :  { %676 = shalt.err (!%p673_p4)
}
 0x24e   :  { %523 = dma.vmem_to_hbm [thread:$0]  %s521_s11, 64, %s830_s5, [#allocation3]  }
 0x24f   :  { %685 = dma.done.wait [#allocation3], 64  }
 0x250   :  { %686 = vsyncadd [#allocation3], 4294967232 }
 0x251   :  { %527 = vsyncpa [#allocation3], 1 }

</bundles_post_ra>
